<compile_context>
chip_gen: v6e
topology: v6e:2x2x1
jax: 0.10.0
libtpu: 0.0.40
codegen_flags: <defaults>
</compile_context>

<pallas_src>
import jax
import jax.numpy as jnp
from jax import lax
from jax.experimental import pallas as pl
from jax.experimental.pallas import tpu as pltpu


def _loss_kernel(ind_ref,     # (K, 1) int32  VMEM  -- gather indices for this batch
                 feat_ref,    # (HW, C)       VMEM  -- per-batch NHWC feature slab
                 mask_ref,    # (K, C)        VMEM
                 target_ref,  # (K, C)        VMEM
                 out_ref):    # (1, C) f32    VMEM  -- per-batch per-channel |err| sums
    k_dim, _ = ind_ref.shape
    hw, _ = feat_ref.shape

    # Gather the K selected rows from the VMEM-resident slab via a one-hot
    # matmul: pred[k, c] = sum_hw onehot[k, hw] * feat[hw, c].  The (K, HW)
    # one-hot is lane-dense (HW is a multiple of 128) and the contraction runs
    # on the MXU, so the gather is a single vectorized op instead of K tiny
    # DMAs / grid steps.  Out-of-range ind would produce an all-zero row
    # (pred = 0) rather than faulting.
    # TODO(synk): for very large heads (HW*C slab > VMEM budget, esp. v7x's
    # 64 MiB) tile HW or fall back to a manual deep-prefetch row-gather.
    row_ids = lax.broadcasted_iota(jnp.int32, (k_dim, hw), 1)
    onehot = (row_ids == ind_ref[...]).astype(feat_ref.dtype)        # (K, HW)
    pred = jnp.dot(onehot, feat_ref[...],
                   preferred_element_type=jnp.float32)               # (K, C) f32

    m = mask_ref[...].astype(jnp.float32)
    t = target_ref[...].astype(jnp.float32)
    # Keep the exact |pred*m - t*m| form (valid for masks/weights of any sign).
    diff = jnp.abs(pred * m - t * m)                                  # (K, C)
    out_ref[...] = jnp.sum(diff, axis=0, keepdims=True)               # (1, C)


def reg_weighted_l1_loss(output, mask, ind, target):
    """output: (B, C, H, W), mask: (B, K, C), ind: (B, K) int, target: (B, K, C)."""
    B, C, H, W = output.shape
    K = ind.shape[1]
    HW = H * W

    # NCHW -> (B, HW, C) feature slab at native dtype (no forced f32 HBM copy).
    # TODO(synk): if the producing conv can emit NHWC directly, this transpose
    # (one extra full pass over the feature map in XLA) disappears.
    feat = jnp.transpose(output, (0, 2, 3, 1)).reshape(B, HW, C)
    ind_i32 = ind.astype(jnp.int32).reshape(B, K, 1)

    grid_spec = pltpu.PrefetchScalarGridSpec(
        num_scalar_prefetch=0,
        grid=(B,),
        in_specs=[
            pl.BlockSpec((None, K, 1), lambda b: (b, 0, 0)),    # ind
            pl.BlockSpec((None, HW, C), lambda b: (b, 0, 0)),   # feature slab
            pl.BlockSpec((None, K, C), lambda b: (b, 0, 0)),    # mask
            pl.BlockSpec((None, K, C), lambda b: (b, 0, 0)),    # target
        ],
        out_specs=pl.BlockSpec((None, 1, C), lambda b: (b, 0, 0)),
    )

    abs_part = pl.pallas_call(
        _loss_kernel,
        out_shape=jax.ShapeDtypeStruct((B, 1, C), jnp.float32),
        grid_spec=grid_spec,
        compiler_params=pltpu.CompilerParams(
            dimension_semantics=("parallel",)),
    )(ind_i32, feat, mask, target)

    # The mask sum is gather-independent: keep it in plain JAX (XLA fuses it
    # with the final divide) instead of a second in-kernel accumulator output.
    mask_sum = jnp.sum(mask.astype(jnp.float32))
    return jnp.sum(abs_part) / (mask_sum + jnp.float32(1e-4))


def _reference(output, mask, ind, target):
    B, C, H, W = output.shape
    feat = jnp.transpose(output, (0, 2, 3, 1)).reshape(B, H * W, C)
    pred = jax.vmap(lambda f, i: f[i])(feat, ind)          # (B, K, C)
    m = mask.astype(jnp.float32)
    loss = jnp.sum(jnp.abs(pred * m - target * m))
    return loss / (jnp.sum(m) + 1e-4)


if __name__ == "__main__":
    B, C, H, W, K = 2, 4, 16, 16, 8
    key = jax.random.PRNGKey(0)
    k1, k2, k3, k4 = jax.random.split(key, 4)

    output = jax.random.normal(k1, (B, C, H, W), dtype=jnp.float32)
    ind = jax.random.randint(k2, (B, K), 0, H * W, dtype=jnp.int32)
    mask = (jax.random.uniform(k3, (B, K, C)) > 0.5).astype(jnp.float32)
    target = jax.random.normal(k4, (B, K, C), dtype=jnp.float32)

    loss = jax.block_until_ready(reg_weighted_l1_loss(output, mask, ind, target))
    ref = jax.block_until_ready(_reference(output, mask, ind, target))

    assert jnp.allclose(loss, ref, rtol=1e-5, atol=1e-5), (loss, ref)
    print("KERNEL_OK")
</pallas_src>

<mosaic_0001>
module attributes {stable_mosaic.version = 11 : i64} {
  func.func @_loss_kernel(%arg0: i32, %arg1: memref<1x8x1xi32, #tpu.memory_space<vmem>>, %arg2: memref<1x256x4xf32, #tpu.memory_space<vmem>>, %arg3: memref<1x8x4xf32, #tpu.memory_space<vmem>>, %arg4: memref<1x8x4xf32, #tpu.memory_space<vmem>>, %arg5: memref<1x1x4xf32, #tpu.memory_space<vmem>>) attributes {dimension_semantics = [#tpu.dimension_semantics<parallel>], iteration_bounds = array<i64: 2>, scalar_prefetch = 0 : i64, scratch_operands = 0 : i64, tpu.core_type = #tpu.core_type<tc>, window_params = [{transform_indices = @transform_0, window_bounds = array<i64: 1, 8, 1>}, {transform_indices = @transform_1, window_bounds = array<i64: 1, 256, 4>}, {transform_indices = @transform_2, window_bounds = array<i64: 1, 8, 4>}, {transform_indices = @transform_3, window_bounds = array<i64: 1, 8, 4>}, {transform_indices = @transform_4, window_bounds = array<i64: 1, 1, 4>}]} {
    %0 = tpu.iota {dimensions = array<i32: 1>} : vector<8x256xi32>
    %c0 = arith.constant 0 : index
    %c0_0 = arith.constant 0 : index
    %c0_1 = arith.constant 0 : index
    %1 = vector.load %arg1[%c0, %c0_0, %c0_1] : memref<1x8x1xi32, #tpu.memory_space<vmem>>, vector<1x8x1xi32>
    %2 = vector.shape_cast %1 : vector<1x8x1xi32> to vector<8x1xi32>
    %3 = vector.broadcast %2 : vector<8x1xi32> to vector<8x256xi32>
    %4 = arith.cmpi eq, %0, %3 : vector<8x256xi32>
    %5 = arith.extui %4 : vector<8x256xi1> to vector<8x256xi32>
    %6 = arith.sitofp %5 : vector<8x256xi32> to vector<8x256xf32>
    %c0_2 = arith.constant 0 : index
    %c0_3 = arith.constant 0 : index
    %c0_4 = arith.constant 0 : index
    %7 = vector.load %arg2[%c0_2, %c0_3, %c0_4] : memref<1x256x4xf32, #tpu.memory_space<vmem>>, vector<1x256x4xf32>
    %8 = vector.shape_cast %7 : vector<1x256x4xf32> to vector<256x4xf32>
    %cst = arith.constant dense<0.000000e+00> : vector<8x4xf32>
    %9 = tpu.matmul %6, %8, %cst {dimension_numbers = #tpu.dot_dimension_numbers<[1], [0], [0], [1], [0, 0, 1, 1], [], []>} : vector<8x256xf32>, vector<256x4xf32>, vector<8x4xf32> -> vector<8x4xf32>
    %c0_5 = arith.constant 0 : index
    %c0_6 = arith.constant 0 : index
    %c0_7 = arith.constant 0 : index
    %10 = vector.load %arg3[%c0_5, %c0_6, %c0_7] : memref<1x8x4xf32, #tpu.memory_space<vmem>>, vector<1x8x4xf32>
    %11 = vector.shape_cast %10 : vector<1x8x4xf32> to vector<8x4xf32>
    %c0_8 = arith.constant 0 : index
    %c0_9 = arith.constant 0 : index
    %c0_10 = arith.constant 0 : index
    %12 = vector.load %arg4[%c0_8, %c0_9, %c0_10] : memref<1x8x4xf32, #tpu.memory_space<vmem>>, vector<1x8x4xf32>
    %13 = vector.shape_cast %12 : vector<1x8x4xf32> to vector<8x4xf32>
    %14 = arith.mulf %9, %11 : vector<8x4xf32>
    %15 = arith.mulf %13, %11 : vector<8x4xf32>
    %16 = arith.subf %14, %15 : vector<8x4xf32>
    %17 = math.absf %16 : vector<8x4xf32>
    %cst_11 = arith.constant dense<0.000000e+00> : vector<4xf32>
    %18 = vector.multi_reduction <add>, %17, %cst_11 [0] : vector<8x4xf32> to vector<4xf32>
    %19 = vector.shape_cast %18 : vector<4xf32> to vector<1x4xf32>
    %c0_12 = arith.constant 0 : index
    %c0_13 = arith.constant 0 : index
    %c0_14 = arith.constant 0 : index
    %20 = vector.load %arg5[%c0_12, %c0_13, %c0_14] : memref<1x1x4xf32, #tpu.memory_space<vmem>>, vector<1x1x4xf32>
    %21 = vector.shape_cast %20 : vector<1x1x4xf32> to vector<1x4xf32>
    %22 = vector.shape_cast %19 : vector<1x4xf32> to vector<1x1x4xf32>
    tpu.vector_store %arg5[%c0_12, %c0_13, %c0_14], %22 {strides = array<i32>} : memref<1x1x4xf32, #tpu.memory_space<vmem>>, vector<1x1x4xf32>,
    return
  }
  func.func @transform_0(%arg0: i32) -> (i32, i32, i32) {
    %c0_i32 = arith.constant 0 : i32
    %c0_i32_0 = arith.constant 0 : i32
    %c0_i32_1 = arith.constant 0 : i32
    return %arg0, %c0_i32, %c0_i32_0 : i32, i32, i32
  }
  func.func @transform_1(%arg0: i32) -> (i32, i32, i32) {
    %c0_i32 = arith.constant 0 : i32
    %c0_i32_0 = arith.constant 0 : i32
    %c0_i32_1 = arith.constant 0 : i32
    return %arg0, %c0_i32, %c0_i32_0 : i32, i32, i32
  }
  func.func @transform_2(%arg0: i32) -> (i32, i32, i32) {
    %c0_i32 = arith.constant 0 : i32
    %c0_i32_0 = arith.constant 0 : i32
    %c0_i32_1 = arith.constant 0 : i32
    return %arg0, %c0_i32, %c0_i32_0 : i32, i32, i32
  }
  func.func @transform_3(%arg0: i32) -> (i32, i32, i32) {
    %c0_i32 = arith.constant 0 : i32
    %c0_i32_0 = arith.constant 0 : i32
    %c0_i32_1 = arith.constant 0 : i32
    return %arg0, %c0_i32, %c0_i32_0 : i32, i32, i32
  }
  func.func @transform_4(%arg0: i32) -> (i32, i32, i32) {
    %c0_i32 = arith.constant 0 : i32
    %c0_i32_0 = arith.constant 0 : i32
    %c0_i32_1 = arith.constant 0 : i32
    return %arg0, %c0_i32, %c0_i32_0 : i32, i32, i32
  }
}

</mosaic_0001>

<bundles_post_ra>
// kernel: tpu_custom_call.1
= control target key start
LH: loop header
LB: loop body
LE: loop exit
PB: predicated region body
PF: predicated region fallthrough
CT: control target
= control target key end

     0   :  { %9 = vsyncpa [#allocation3], 0  ;;  %s800_s0 = inlined_call_operand.vmem [shape: s32[2,8,1], index: 0, kind: input, shape index: {}]   ;;  %s801_s1 = inlined_call_operand.vmem [shape: f32[2,256,4], index: 1, kind: input, shape index: {}]   ;;  %s802_s2 = inlined_call_operand.vmem [shape: f32[2,8,4], index: 2, kind: input, shape index: {}]   ;;  %s803_s3 = inlined_call_operand.vmem [shape: f32[2,8,4], index: 3, kind: input, shape index: {}]   ;;  %s804_s4 = inlined_call_operand.hbm [shape: f32[2,1,4], index: 4, kind: output, shape index: {}]  }
   0x1   :  { %11 = vsyncpa [#allocation3 + $0x1], 0  ;;  %s665_s15 = smov 0   ;;  %s667_s16 = smov 0  }
   0x2   :  { %s669_s17 = smov 0   ;;  %s671_s18 = smov 0  }
   0x3 LB: > { %s686_s19 = sadd.s32 4294967295, %s635_s18   ;;  %s481_s20 = sadd.s32 4294967294, %s635_s18   ;;  %s635_s18 = sphi %s671_s18, %s810_s18   ;;  %s631_s17 = sphi %s669_s17, %s809_s17   ;;  %s627_s16 = sphi %s667_s16, %s808_s16   ;;  %s623_s15 = sphi %s665_s15, %s807_s15  }
   0x4   : > { %s690_s21 = sadd.s32 1, %s635_s18   ;;  %s128_s22 = sadd.s32 1, %s631_s17 }
   0x5   : > { %s125_s23 = ssub.s32 %s635_s18, %s690_s21  ;;  %p138_p0 = scmp.ne.s32.totalorder %s631_s17, %s627_s16 }
   0x6   : > { %p126_p1 = scmp.eq.s32.totalorder %s125_s23, 0  ;;  %p139_p2 = scmp.eq.s32.totalorder %s686_s19, 1 }
   0x7   : > { %p144_p3 = scmp.ne.s32.totalorder %s627_s16, %s623_s15  ;;  %p145_p4 = scmp.eq.s32.totalorder %s481_s20, 1 }
   0x8   : > { %s701_s24 = scalar_select %p126_p1, %s631_s17, %s128_s22  }
   0x9   : > { %p703_p5 = por %p139_p2, %p138_p0  ;;  %p707_p6 = por %p145_p4, %p144_p3 }
   0xa   : > { %p484_p7 = scmp.ge.s32.totalorder %s635_s18, 1  ;;  %p192_p8 = scmp.lt.s32.totalorder %s635_s18, 3 }
   0xc   : > { %p193_p9 = pnand %p484_p7, %p192_p8 }
   0xd   : > { %p229_p10 = scmp.lt.s32.totalorder (!%p193_p9), %s686_s19, 1  ;;  %s227_s22 = sand.u32 (!%p193_p9), 1, %s627_s16  }
   0xe   : > { %196 = sbr.rel (%p193_p9) target bundleno = 379 (0x17b), region = 36  ;;  %s494_s23 = sshll.u32 (!%p193_p9), %s686_s19, 4 }
   0xf   : > { %s388_s5 = scalar_lea.hbm (!%p193_p9), %s804_s4, %s494_s23  ;;  %s639_s8 = smov (!%p193_p9), [#allocation2]  }
  0x13   : > { %v637_v0 = vmov 0   ;;  %s230_s27 = scalar_select %p229_p10, %s686_s19, 1  ;;  %v246_v34 = vlaneseq  ;;  %v638_v38 = vmov 1.0   ;;  %vm367_vm2 = vcmask 31744  }
  0x14   : > { %574 = vset.pattern.permute.xlu0 %v637_v0  ;;  %vm375_vm3 = vcmask 24576  }
  0x15   : > { %s715_s28 = sshll.u32 %s230_s27, 3  ;;  %s497_s29 = sshll.u32 %s230_s27, 8  ;;  %v247_v35 = vand.u32 127, %v246_v34 }
  0x16   : > { %s232_s6 = scalar_lea.vmem %s800_s0, %s715_s28  ;;  %s724_s9 = scalar_lea.vmem %s801_s1, %s497_s29 }
  0x17   : > { %v249_v1 = vld [vmem:[%s232_s6] sm:$0xff]  ;;  %v290_v2 = vld [vmem:[%s724_s9 + $0xf8] sm:$0xff]  ;;  %v289_v4 = vld [vmem:[%s724_s9 + $0xf0] sm:$0xff]  ;;  %v248_v36 = vadd.s32 128, %v247_v35  ;;  %s245_s12 = scalar_lea.vmem %s803_s3, %s715_s28  ;;  %s241_s20 = scalar_lea.vmem %s802_s2, %s715_s28 }
  0x18   : > { %v274_v3 = vld [vmem:[%s724_s9 + $0x78] sm:$0xff]  ;;  %251 = vperm.xlu0 %574, %v249_v1   ;;  %498 = vmatprep.subr.mxu0 %v290_v2  ;;  %v273_v5 = vld [vmem:[%s724_s9 + $0x70] sm:$0xff]  ;;  %v288_v6 = vld [vmem:[%s724_s9 + $0xe8] sm:$0xff]  ;;  %s228_s27 = scalar_lea.vmem [#allocation2], %s227_s22  ;;  %s378_s6 = scalar_lea.sflag [#allocation3], %s227_s22 }
  0x19   : > { %499 = vmatpush3.msra.mxu0 %v274_v3  ;;  %v272_v7 = vld [vmem:[%s724_s9 + $0x68] sm:$0xff]  ;;  %v287_v8 = vld [vmem:[%s724_s9 + $0xe0] sm:$0xff]  ;;  %v286_v10 = vld [vmem:[%s724_s9 + $0xd8] sm:$0xff]  ;;  %s390_s28 = sshll.u32 %s228_s27, 4  ;;  %s391_s28 = int_to_ptr.vmem [resolvable:$true] %s390_s28 }
  0x1a   : > { %500 = vmatprep.subr.mxu0 %v289_v4  ;;  %v271_v9 = vld [vmem:[%s724_s9 + $0x60] sm:$0xff]  ;;  %v270_v11 = vld [vmem:[%s724_s9 + $0x58] sm:$0xff]  ;;  %v285_v12 = vld [vmem:[%s724_s9 + $0xd0] sm:$0xff]  ;;  %s575_s7 = scalar_lea.vmem %s391_s28, 16 }
  0x1b   : > { %501 = vmatpush3.msra.mxu0 %v273_v5  ;;  %v269_v13 = vld [vmem:[%s724_s9 + $0x50] sm:$0xff]  ;;  %v284_v14 = vld [vmem:[%s724_s9 + $0xc8] sm:$0xff]  ;;  %v283_v16 = vld [vmem:[%s724_s9 + $0xc0] sm:$0xff]  ;;  %p576_p11 = scmp.ne.s32.totalorder %s391_s28, %s575_s7 }
  0x1c   : > { %502 = vmatprep.subr.mxu0 %v288_v6  ;;  %v268_v15 = vld [vmem:[%s724_s9 + $0x48] sm:$0xff]  ;;  %v267_v17 = vld [vmem:[%s724_s9 + $0x40] sm:$0xff]  ;;  %v282_v18 = vld [vmem:[%s724_s9 + $0xb8] sm:$0xff] }
  0x1d   : > { %503 = vmatpush3.msra.mxu0 %v272_v7  ;;  %v266_v19 = vld [vmem:[%s724_s9 + $0x38] sm:$0xff]  ;;  %v281_v20 = vld [vmem:[%s724_s9 + $0xb0] sm:$0xff]  ;;  %v280_v22 = vld [vmem:[%s724_s9 + $0xa8] sm:$0xff]  ;;  %p577_p12 = pnand %p576_p11, %p703_p5 }
  0x1e   : > { %504 = vmatprep.subr.mxu0 %v287_v8  ;;  %v265_v21 = vld [vmem:[%s724_s9 + $0x30] sm:$0xff]  ;;  %v264_v23 = vld [vmem:[%s724_s9 + $0x28] sm:$0xff]  ;;  %v279_v24 = vld [vmem:[%s724_s9 + $0xa0] sm:$0xff] }
  0x1f   : > { %505 = vmatpush3.msra.mxu0 %v271_v9  ;;  %v263_v25 = vld [vmem:[%s724_s9 + $0x20] sm:$0xff]  ;;  %v278_v26 = vld [vmem:[%s724_s9 + $0x98] sm:$0xff]  ;;  %v277_v28 = vld [vmem:[%s724_s9 + $0x90] sm:$0xff]  ;;  %p578_p13 = pneg %p577_p12 }
  0x20   : > { %506 = vmatprep.subr.mxu0 %v286_v10  ;;  %v262_v27 = vld [vmem:[%s724_s9 + $0x18] sm:$0xff]  ;;  %v261_v29 = vld [vmem:[%s724_s9 + $0x10] sm:$0xff]  ;;  %v276_v30 = vld [vmem:[%s724_s9 + $0x88] sm:$0xff] }
  0x21   : > { %507 = vmatpush3.msra.mxu0 %v270_v11  ;;  %v260_v31 = vld [vmem:[%s724_s9 + $0x8] sm:$0xff]  ;;  %v275_v32 = vld [vmem:[%s724_s9 + $0x80] sm:$0xff] }
  0x22   : > { %508 = vmatprep.subr.mxu0 %v285_v12  ;;  %v259_v33 = vld [vmem:[%s724_s9] sm:$0xff]  ;;  %s579_s9 = sshll.u32 %s639_s8, 4  ;;  %s580_s9 = int_to_ptr.vmem [resolvable:$false] %s579_s9 }
  0x23   : > { %509 = vmatpush3.msra.mxu0 %v269_v13  ;;  %v361_v40 = vld [vmem:[%s241_s20] sm:$0xff]  ;;  %s581_s19 = scalar_lea.vmem %s580_s9, 32  ;;  %p582_p0 = scmp.lt.s32.totalorder %s391_s28, %s580_s9 }
  0x24   : > { %510 = vmatprep.subr.mxu0 %v284_v14  ;;  %v362_v41 = vld [vmem:[%s245_s12] sm:$0xff]  ;;  %p583_p1 = scmp.lt.s32.totalorder %s581_s19, %s575_s7 }
  0x25   : > { %511 = vmatpush3.msra.mxu0 %v268_v15  ;;  %v364_v44 = vmul.f32 %v362_v41, %v361_v40 }
  0x26   : > { %512 = vmatprep.subr.mxu0 %v283_v16  ;;  %p584_p2 = por %p583_p1, %p582_p0 }
  0x27   : > { %513 = vmatpush3.msra.mxu0 %v267_v17 }
  0x28   : > { %514 = vmatprep.subr.mxu0 %v282_v18  ;;  %p585_p3 = pnand %p584_p2, %p578_p13 }
  0x29   : > { %515 = vmatpush3.msra.mxu0 %v266_v19 }
  0x2a   : > { %516 = vmatprep.subr.mxu0 %v281_v20 }
  0x2b   : > { %517 = vmatpush3.msra.mxu0 %v265_v21 }
  0x2c   : > { %518 = vmatprep.subr.mxu0 %v280_v22 }
  0x2d   : > { %519 = vmatpush3.msra.mxu0 %v264_v23 }
  0x2e   : > { %520 = vmatprep.subr.mxu0 %v279_v24 }
  0x2f   : > { %521 = vmatpush3.msra.mxu0 %v263_v25 }
  0x30   : > { %522 = vmatprep.subr.mxu0 %v278_v26 }
  0x31   : > { %523 = vmatpush3.msra.mxu0 %v262_v27 }
  0x32   : > { %524 = vmatprep.subr.mxu0 %v277_v28 }
  0x33   : > { %525 = vmatpush3.msra.mxu0 %v261_v29 }
  0x34   : > { %526 = vmatprep.subr.mxu0 %v276_v30 }
  0x35   : > { %527 = vmatpush3.msra.mxu0 %v260_v31 }
  0x36   : > { %528 = vmatprep.subr.mxu0 %v275_v32 }
  0x37   : > { %529 = vmatpush3.msra.mxu0 %v259_v33 }
  0x93   : > { %v252_v37 = vpop.permute.xlu0 %251 }
  0x94   : > { %vm253_vm0 = vcmp.eq.s32.totalorder %v247_v35, %v252_v37  ;;  %vm254_vm1 = vcmp.eq.s32.totalorder %v248_v36, %v252_v37 }
  0x95   : > { %492 = vmatprep.mubr.msk.f32.mxu0 %vm254_vm1, %v638_v38 }
  0x96   : > { %493 = vmatmul.mubr.msk.f32.vlgmr.msra.gmra.mxu0 %vm253_vm0, %v638_v38 }
 0x156   : > { %v530_v39 = vpop.f32.mrf.mxu0 }
 0x158   : > { %v531_v42 = vpop.f32.mrf.mxu0 }
 0x159   : > { %v532_v43 = vadd.f32 %v531_v42, %v530_v39 }
 0x15b   : > { %v363_v45 = vmul.f32 %v532_v43, %v361_v40 }
 0x15d   : > { %v365_v46 = vsub.f32 %v363_v45, %v364_v44 }
 0x15f   : > { %v366_v47 = vand.u32 2147483647, %v365_v46 }
 0x161   : > { %v368_v48 = vsel %vm367_vm2, %v366_v47, 0.0 }
 0x162   : > { %v369_v49 = vrot.slane %v368_v48, 4 }
 0x164   : > { %v370_v50 = vadd.f32 %v369_v49, %v368_v48 }
 0x166   : > { %v371_v51 = vrot.slane %v370_v50, 2 }
 0x168   : > { %v372_v52 = vadd.f32 %v371_v51, %v370_v50 }
 0x16a   : > { %v373_v53 = vrot.slane %v372_v52, 1 }
 0x16c   : > { %v374_v54 = vadd.f32 %v373_v53, %v372_v52 }
 0x16e   : > { %376 = vst.msk [vmem:[%s228_s27] sm:$0x1] %vm375_vm3, %v374_v54 }
 0x16f   : > { %588 = shalt.err (!%p585_p3)
}
 0x170   : > { %s589_s10 = scalar_lea.hbm %s388_s5, 16  ;;  %s593_s13 = scalar_lea.hbm %s804_s4, 32 }
 0x171   : > { %p590_p4 = scmp.ne.s32.totalorder %s388_s5, %s589_s10  ;;  %p594_p9 = scmp.lt.s32.totalorder %s388_s5, %s804_s4 }
 0x172   : > { %p595_p10 = scmp.lt.s32.totalorder %s593_s13, %s589_s10 }
 0x173   : > { %p591_p7 = pnand %p590_p4, %p703_p5 }
 0x174   : > { %p596_p11 = por %p595_p10, %p594_p9 }
 0x175   : > { %p592_p8 = pneg %p591_p7 }
 0x177   : > { %p597_p12 = pnand %p596_p11, %p592_p8 }
 0x179   : > { %600 = shalt.err (!%p597_p12)
}
 0x17a   : > { %533 = dma.vmem_to_hbm [thread:$0]  (%p703_p5), %s391_s28, 16, %s388_s5, %s378_s6  }
 0x17b PF: > { %p539_p13 = scmp.ge.s32.totalorder %s635_s18, 2  ;;  %s402_s22 = sand.u32 1, %s623_s15  }
 0x17c   : > { %s403_s23 = scalar_lea.sflag [#allocation3], %s402_s22 }
 0x17d   : > { %p536_p0 = pnand %p539_p13, %p707_p6 }
 0x17f   : > { %p537_p1 = pneg %p536_p0 }
 0x181   : > { %618 = dma.done.wait (%p537_p1), %s403_s23, 16  }
 0x182   : > { %620 = vsyncadd (%p537_p1), %s403_s23, 4294967280  ;;  %p14_p2 = scmp.ge.s32.totalorder %s690_s21, 4   ;;  %s807_s15 = smov %s627_s16 }
 0x183   : > { %s808_s16 = smov %s631_s17  ;;  %s809_s17 = smov %s701_s24 }
 0x184   : > { %s810_s18 = smov %s690_s21  ;;  %16 = sbr.rel (!%p14_p2) target bundleno = 3 (0x3), region = 80 }
 0x189   :  { %407 = vsyncpa [#allocation3], 1 }
 0x18a   :  { %409 = vsyncpa [#allocation3 + $0x1], 1 }

</bundles_post_ra>
